<compile_context>
chip_gen: v7x
topology: tpu7x:2x2x1
jax: 0.10.0
libtpu: 0.0.40
codegen_flags: <defaults>
</compile_context>

<pallas_src>
import jax
import jax.numpy as jnp
from jax import lax
from jax.experimental import pallas as pl
from jax.experimental.pallas import tpu as pltpu

EPS = 1e-5
LANE = 128


def _cdiv(a, b):
    return -(-a // b)


def _round_up(x, m):
    return _cdiv(x, m) * m


# --------------------------------------------------------------------------- #
# Kernel 1: conv matmul (lane-dense, per-image tiles) + per-tile BN partials.
# --------------------------------------------------------------------------- #
def conv_stats_kernel(w_ref, p_ref, y_ref, stats_ref):
    # w_ref:     (OC, K)        resident across the whole grid
    # p_ref:     (1, K, TM)     one M-tile of one image's patch matrix
    # y_ref:     (1, OC, TM)    pre-BN conv output (bf16 on the default path)
    # stats_ref: (1, 1, OC, 2)  per-tile [sum, sum_sq] per channel (f32)
    y = jnp.dot(w_ref[...], p_ref[0], preferred_element_type=jnp.float32)
    y_ref[0] = y.astype(y_ref.dtype)            # downcast only after stats use y
    s1 = jnp.sum(y, axis=1, keepdims=True)      # (OC, 1) lane reduce -> XLU
    s2 = jnp.sum(y * y, axis=1, keepdims=True)  # (OC, 1)
    stats_ref[0, 0] = jnp.concatenate([s1, s2], axis=1)


# --------------------------------------------------------------------------- #
# Kernel 2: fused BN affine (precomputed scale/shift) + ReLU; NCHW-order write.
# --------------------------------------------------------------------------- #
def bn_relu_kernel(ss_ref, y_ref, o_ref):
    # ss_ref: (OC, 2)  [:,0]=scale, [:,1]=shift ; y_ref/o_ref: (1, OC, TM)
    scale = ss_ref[:, 0:1]
    shift = ss_ref[:, 1:2]
    y = y_ref[0].astype(jnp.float32)
    o_ref[0] = jnp.maximum(y * scale + shift, 0.0).astype(o_ref.dtype)


# --------------------------------------------------------------------------- #
# Wrapper.
# --------------------------------------------------------------------------- #
def fully_conv_network_forward(x_nchw, conv_w, conv_b, bn_gamma, bn_beta,
                               *, tile_m=8192, use_bf16=True):
    """(N, 3, H, W) -> Conv2d(3,8,4,2,1) + BatchNorm2d(train) + ReLU -> (N, 8, H//2, W//2)."""
    oc, ic, kh, kw = conv_w.shape
    n, c, h, w = x_nchw.shape
    stride, pad = 2, 1
    oh = (h + 2 * pad - kh) // stride + 1
    ow = (w + 2 * pad - kw) // stride + 1
    k = ic * kh * kw
    mi = oh * ow                                   # real output pixels per image

    # conv_b is accepted for API parity but intentionally unused: training-mode
    # BatchNorm's mean subtraction cancels any per-channel constant exactly,
    # and omitting it keeps the zero-padded columns neutral in sum / sum_sq.
    # (If an eval-mode / running-stats path is added, fold conv_b into `shift`
    # and fix the padded-column handling.)
    del conv_b

    compute_dtype = jnp.bfloat16 if use_bf16 else jnp.float32
    y_dtype = jnp.bfloat16 if use_bf16 else jnp.float32
    out_dtype = x_nchw.dtype

    # ---- glue im2col: one fused patch-extraction op, channel-major (c,kh,kw)
    # order (matches conv_w.reshape(OC, C*KH*KW)).  Cast first so the patch
    # write + kernel read happen at bf16 width on the default path.
    xc = x_nchw.astype(compute_dtype)
    patches = lax.conv_general_dilated_patches(
        xc, (kh, kw), (stride, stride), ((pad, pad), (pad, pad)),
        dimension_numbers=("NCHW", "OIHW", "NCHW"))          # (N, K, OH, OW)
    patches = patches.reshape(n, k, mi)

    # ---- balanced, 128-aligned per-image tiling of the M = OH*OW axis.
    tile_m = max(LANE, tile_m)
    mi_128 = _round_up(mi, LANE)
    t = _cdiv(mi_128, tile_m)                     # tiles per image
    if n * t < 2 and mi_128 >= 2 * LANE:
        t = 2                                     # keep >=2 parallel programs (v7x megacore)
    tm = _round_up(_cdiv(mi_128, t), LANE)
    mi_pad = t * tm
    if mi_pad != mi:
        # Zero columns contribute 0 to sum/sum_sq; stats divide by the real count.
        patches = jnp.pad(patches, ((0, 0), (0, 0), (0, mi_pad - mi)))

    w_mat = conv_w.reshape(oc, k).astype(compute_dtype)

    # ---- pass 1: conv matmul + per-tile BN partial sums.  Grid fully parallel.
    y, stats = pl.pallas_call(
        conv_stats_kernel,
        out_shape=(jax.ShapeDtypeStruct((n, oc, mi_pad), y_dtype),
                   jax.ShapeDtypeStruct((n, t, oc, 2), jnp.float32)),
        grid=(n, t),
        in_specs=[
            pl.BlockSpec((oc, k), lambda b, j: (0, 0)),        # weights, resident
            pl.BlockSpec((1, k, tm), lambda b, j: (b, 0, j)),  # patch tile
        ],
        out_specs=(
            pl.BlockSpec((1, oc, tm), lambda b, j: (b, 0, j)),       # lane-dense y
            pl.BlockSpec((1, 1, oc, 2), lambda b, j: (b, j, 0, 0)),  # per-tile stats
        ),
        compiler_params=pltpu.CompilerParams(
            dimension_semantics=("parallel", "parallel")),
    )(w_mat, patches)

    # ---- tiny glue reduction -> one per-channel (scale, shift).
    totals = stats.sum(axis=(0, 1))                            # (OC, 2) f32
    count = n * mi
    mean = totals[:, 0] / count
    var = totals[:, 1] / count - mean * mean                   # biased variance
    var = jnp.maximum(var, 0.0)                                # guard cancellation
    scale = bn_gamma.astype(jnp.float32) * lax.rsqrt(var + EPS)
    shift = bn_beta.astype(jnp.float32) - mean * scale
    ss = jnp.stack([scale, shift], axis=1)                     # (OC, 2) f32

    # ---- pass 2: y * scale + shift, ReLU; written directly in NCHW layout.
    out = pl.pallas_call(
        bn_relu_kernel,
        out_shape=jax.ShapeDtypeStruct((n, oc, mi_pad), out_dtype),
        grid=(n, t),
        in_specs=[
            pl.BlockSpec((oc, 2), lambda b, j: (0, 0)),        # scale/shift, resident
            pl.BlockSpec((1, oc, tm), lambda b, j: (b, 0, j)),
        ],
        out_specs=pl.BlockSpec((1, oc, tm), lambda b, j: (b, 0, j)),
        compiler_params=pltpu.CompilerParams(
            dimension_semantics=("parallel", "parallel")),
    )(ss, y)

    # Per-image unpad (no-op when OH*OW is already a multiple of 128) + a free
    # contiguous reshape; no post-kernel NCHW transpose any more.
    if mi_pad != mi:
        out = out[:, :, :mi]
    return out.reshape(n, oc, oh, ow)


def _reference_forward(x, conv_w, conv_b, gamma, beta):
    """Pure-JAX reference (conv + bias + training-mode BN + ReLU)."""
    y = lax.conv_general_dilated(
        x, conv_w, window_strides=(2, 2), padding=((1, 1), (1, 1)),
        dimension_numbers=("NCHW", "OIHW", "NCHW"))
    y = y + conv_b[None, :, None, None]
    mean = jnp.mean(y, axis=(0, 2, 3), keepdims=True)
    var = jnp.mean((y - mean) ** 2, axis=(0, 2, 3), keepdims=True)
    y = (y - mean) * lax.rsqrt(var + EPS)
    y = y * gamma[None, :, None, None] + beta[None, :, None, None]
    return jnp.maximum(y, 0.0)


if __name__ == "__main__":
    key = jax.random.PRNGKey(0)
    k_x, k_w, k_b = jax.random.split(key, 3)

    N, C, H, W = 2, 3, 16, 16
    OC, KH, KW = 8, 4, 4

    x = jax.random.normal(k_x, (N, C, H, W), dtype=jnp.float32)

    fan_in = C * KH * KW
    conv_w = jax.random.normal(k_w, (OC, C, KH, KW), dtype=jnp.float32) / jnp.sqrt(fan_in)
    conv_b = 0.01 * jax.random.normal(k_b, (OC,), dtype=jnp.float32)
    bn_gamma = jnp.ones((OC,), dtype=jnp.float32)   # PyTorch BatchNorm2d defaults
    bn_beta = jnp.zeros((OC,), dtype=jnp.float32)

    fwd = jax.jit(fully_conv_network_forward,
                  static_argnames=("tile_m", "use_bf16"))

    ref = _reference_forward(x, conv_w, conv_b, bn_gamma, bn_beta)

    # f32 path: exact math, tight tolerance.
    out_f32 = jax.block_until_ready(
        fwd(x, conv_w, conv_b, bn_gamma, bn_beta, use_bf16=False))
    assert out_f32.shape == (N, OC, H // 2, W // 2), out_f32.shape
    err_f32 = float(jnp.max(jnp.abs(out_f32 - ref)))
    assert jnp.allclose(out_f32, ref, atol=1e-4, rtol=1e-4), err_f32

    # bf16 default path (bf16 patch/weight/y HBM streams, f32 MXU accumulate).
    out_bf16 = jax.block_until_ready(fwd(x, conv_w, conv_b, bn_gamma, bn_beta))
    assert out_bf16.shape == (N, OC, H // 2, W // 2), out_bf16.shape
    err_bf16 = float(jnp.max(jnp.abs(out_bf16 - ref)))
    assert jnp.allclose(out_bf16, ref, atol=5e-2, rtol=5e-2), err_bf16

    print("KERNEL_OK")
</pallas_src>

<mosaic_0001>
module attributes {stable_mosaic.version = 11 : i64} {
  func.func @conv_stats_kernel(%arg0: i32, %arg1: i32, %arg2: memref<8x48xf32, #tpu.memory_space<vmem>>, %arg3: memref<1x48x128xf32, #tpu.memory_space<vmem>>, %arg4: memref<1x8x128xf32, #tpu.memory_space<vmem>>, %arg5: memref<1x1x8x2xf32, #tpu.memory_space<vmem>>) attributes {dimension_semantics = [#tpu.dimension_semantics<parallel>, #tpu.dimension_semantics<parallel>], iteration_bounds = array<i64: 2, 1>, scalar_prefetch = 0 : i64, scratch_operands = 0 : i64, tpu.core_type = #tpu.core_type<tc>, window_params = [{pipeline_mode = #tpu.pipeline_mode<synchronous>, transform_indices = @transform_0, window_bounds = array<i64: 8, 48>}, {transform_indices = @transform_1, window_bounds = array<i64: 1, 48, 128>}, {transform_indices = @transform_2, window_bounds = array<i64: 1, 8, 128>}, {transform_indices = @transform_3, window_bounds = array<i64: 1, 1, 8, 2>}]} {
    %c0 = arith.constant 0 : index
    %c0_0 = arith.constant 0 : index
    %0 = vector.load %arg2[%c0, %c0_0] : memref<8x48xf32, #tpu.memory_space<vmem>>, vector<8x48xf32>
    %c0_1 = arith.constant 0 : index
    %c0_2 = arith.constant 0 : index
    %c0_3 = arith.constant 0 : index
    %1 = vector.load %arg3[%c0_1, %c0_2, %c0_3] : memref<1x48x128xf32, #tpu.memory_space<vmem>>, vector<1x48x128xf32>
    %2 = vector.shape_cast %1 : vector<1x48x128xf32> to vector<48x128xf32>
    %cst = arith.constant dense<0.000000e+00> : vector<8x128xf32>
    %3 = tpu.matmul %0, %2, %cst {dimension_numbers = #tpu.dot_dimension_numbers<[1], [0], [0], [1], [0, 0, 1, 1], [], []>} : vector<8x48xf32>, vector<48x128xf32>, vector<8x128xf32> -> vector<8x128xf32>
    %c0_4 = arith.constant 0 : index
    %c0_5 = arith.constant 0 : index
    %c0_6 = arith.constant 0 : index
    %4 = vector.load %arg4[%c0_4, %c0_5, %c0_6] : memref<1x8x128xf32, #tpu.memory_space<vmem>>, vector<1x8x128xf32>
    %5 = vector.shape_cast %4 : vector<1x8x128xf32> to vector<8x128xf32>
    %6 = vector.shape_cast %3 : vector<8x128xf32> to vector<1x8x128xf32>
    tpu.vector_store %arg4[%c0_4, %c0_5, %c0_6], %6 {strides = array<i32>} : memref<1x8x128xf32, #tpu.memory_space<vmem>>, vector<1x8x128xf32>,
    %cst_7 = arith.constant dense<0.000000e+00> : vector<8xf32>
    %7 = vector.multi_reduction <add>, %3, %cst_7 [1] : vector<8x128xf32> to vector<8xf32>
    %8 = vector.shape_cast %7 : vector<8xf32> to vector<8x1xf32>
    %9 = arith.mulf %3, %3 : vector<8x128xf32>
    %cst_8 = arith.constant dense<0.000000e+00> : vector<8xf32>
    %10 = vector.multi_reduction <add>, %9, %cst_8 [1] : vector<8x128xf32> to vector<8xf32>
    %11 = vector.shape_cast %10 : vector<8xf32> to vector<8x1xf32>
    %12 = tpu.concatenate %8, %11 in 1 : vector<8x1xf32>, vector<8x1xf32> -> vector<8x2xf32>
    %c0_9 = arith.constant 0 : index
    %c0_10 = arith.constant 0 : index
    %c0_11 = arith.constant 0 : index
    %c0_12 = arith.constant 0 : index
    %13 = vector.load %arg5[%c0_9, %c0_10, %c0_11, %c0_12] : memref<1x1x8x2xf32, #tpu.memory_space<vmem>>, vector<1x1x8x2xf32>
    %14 = vector.shape_cast %13 : vector<1x1x8x2xf32> to vector<8x2xf32>
    %15 = vector.shape_cast %12 : vector<8x2xf32> to vector<1x1x8x2xf32>
    tpu.vector_store %arg5[%c0_9, %c0_10, %c0_11, %c0_12], %15 {strides = array<i32>} : memref<1x1x8x2xf32, #tpu.memory_space<vmem>>, vector<1x1x8x2xf32>,
    return
  }
  func.func @transform_0(%arg0: i32, %arg1: i32) -> (i32, i32) {
    %c0_i32 = arith.constant 0 : i32
    %c0_i32_0 = arith.constant 0 : i32
    %c0_i32_1 = arith.constant 0 : i32
    return %c0_i32, %c0_i32_0 : i32, i32
  }
  func.func @transform_1(%arg0: i32, %arg1: i32) -> (i32, i32, i32) {
    %c0_i32 = arith.constant 0 : i32
    %c0_i32_0 = arith.constant 0 : i32
    return %arg0, %c0_i32, %arg1 : i32, i32, i32
  }
  func.func @transform_2(%arg0: i32, %arg1: i32) -> (i32, i32, i32) {
    %c0_i32 = arith.constant 0 : i32
    %c0_i32_0 = arith.constant 0 : i32
    return %arg0, %c0_i32, %arg1 : i32, i32, i32
  }
  func.func @transform_3(%arg0: i32, %arg1: i32) -> (i32, i32, i32, i32) {
    %c0_i32 = arith.constant 0 : i32
    %c0_i32_0 = arith.constant 0 : i32
    %c0_i32_1 = arith.constant 0 : i32
    return %arg0, %arg1, %c0_i32, %c0_i32_0 : i32, i32, i32, i32
  }
}

module attributes {stable_mosaic.version = 11 : i64} {
  func.func @bn_relu_kernel(%arg0: i32, %arg1: i32, %arg2: memref<8x2xf32, #tpu.memory_space<vmem>>, %arg3: memref<1x8x128xf32, #tpu.memory_space<vmem>>, %arg4: memref<1x8x128xf32, #tpu.memory_space<vmem>>) attributes {dimension_semantics = [#tpu.dimension_semantics<parallel>, #tpu.dimension_semantics<parallel>], iteration_bounds = array<i64: 2, 1>, scalar_prefetch = 0 : i64, scratch_operands = 0 : i64, tpu.core_type = #tpu.core_type<tc>, window_params = [{pipeline_mode = #tpu.pipeline_mode<synchronous>, transform_indices = @transform_0, window_bounds = array<i64: 8, 2>}, {transform_indices = @transform_1, window_bounds = array<i64: 1, 8, 128>}, {transform_indices = @transform_2, window_bounds = array<i64: 1, 8, 128>}]} {
    %c0 = arith.constant 0 : index
    %c0_0 = arith.constant 0 : index
    %0 = vector.load %arg2[%c0, %c0_0] : memref<8x2xf32, #tpu.memory_space<vmem>>, vector<8x1xf32>
    %c0_1 = arith.constant 0 : index
    %c1 = arith.constant 1 : index
    %1 = vector.load %arg2[%c0_1, %c1] : memref<8x2xf32, #tpu.memory_space<vmem>>, vector<8x1xf32>
    %c0_2 = arith.constant 0 : index
    %c0_3 = arith.constant 0 : index
    %c0_4 = arith.constant 0 : index
    %2 = vector.load %arg3[%c0_2, %c0_3, %c0_4] : memref<1x8x128xf32, #tpu.memory_space<vmem>>, vector<1x8x128xf32>
    %3 = vector.shape_cast %2 : vector<1x8x128xf32> to vector<8x128xf32>
    %4 = vector.broadcast %0 : vector<8x1xf32> to vector<8x128xf32>
    %5 = arith.mulf %3, %4 : vector<8x128xf32>
    %6 = vector.broadcast %1 : vector<8x1xf32> to vector<8x128xf32>
    %7 = arith.addf %5, %6 : vector<8x128xf32>
    %cst = arith.constant 0.000000e+00 : f32
    %8 = vector.broadcast %cst : f32 to vector<8x128xf32>
    %9 = arith.maximumf %7, %8 : vector<8x128xf32>
    %c0_5 = arith.constant 0 : index
    %c0_6 = arith.constant 0 : index
    %c0_7 = arith.constant 0 : index
    %10 = vector.load %arg4[%c0_5, %c0_6, %c0_7] : memref<1x8x128xf32, #tpu.memory_space<vmem>>, vector<1x8x128xf32>
    %11 = vector.shape_cast %10 : vector<1x8x128xf32> to vector<8x128xf32>
    %12 = vector.shape_cast %9 : vector<8x128xf32> to vector<1x8x128xf32>
    tpu.vector_store %arg4[%c0_5, %c0_6, %c0_7], %12 {strides = array<i32>} : memref<1x8x128xf32, #tpu.memory_space<vmem>>, vector<1x8x128xf32>,
    return
  }
  func.func @transform_0(%arg0: i32, %arg1: i32) -> (i32, i32) {
    %c0_i32 = arith.constant 0 : i32
    %c0_i32_0 = arith.constant 0 : i32
    %c0_i32_1 = arith.constant 0 : i32
    return %c0_i32, %c0_i32_0 : i32, i32
  }
  func.func @transform_1(%arg0: i32, %arg1: i32) -> (i32, i32, i32) {
    %c0_i32 = arith.constant 0 : i32
    %c0_i32_0 = arith.constant 0 : i32
    return %arg0, %c0_i32, %arg1 : i32, i32, i32
  }
  func.func @transform_2(%arg0: i32, %arg1: i32) -> (i32, i32, i32) {
    %c0_i32 = arith.constant 0 : i32
    %c0_i32_0 = arith.constant 0 : i32
    return %arg0, %c0_i32, %arg1 : i32, i32, i32
  }
}

</mosaic_0001>

<bundles_post_ra>
// kernel: fully_conv_network_forward.2
= control target key start
LH: loop header
LB: loop body
LE: loop exit
PB: predicated region body
PF: predicated region fallthrough
CT: control target
= control target key end

     0   :  { %s545_s12 = smov 0   ;;  %s547_s13 = smov 0   ;;  %s588_s0 = inlined_call_operand.vmem [shape: f32[8,48], index: 0, kind: input, shape index: {}]   ;;  %s589_s1 = inlined_call_operand.vmem [shape: f32[2,48,128], index: 1, kind: input, shape index: {}]   ;;  %s590_s2 = inlined_call_operand.vmem [shape: f32[2,8,128], index: 2, kind: output, shape index: {0}]   ;;  %s591_s3 = inlined_call_operand.vmem [shape: f32[2,1,8,2], index: 3, kind: output, shape index: {1}]  }
   0x1   :  { %s549_s14 = smov 0  }
   0x2 LB: > { %s26_s15 = sadd.s32 1, %s516_s13  ;;  %p432_p0 = scmp.ge.s32.totalorder %s520_s14, 1  ;;  %s520_s14 = sphi %s549_s14, %s14_s14   ;;  %s516_s13 = sphi %s547_s13, %s593_s13   ;;  %s512_s12 = sphi %s545_s12, %s592_s12  }
   0x3   : > { %p28_p1 = scmp.ge.s32.totalorder %s26_s15, 2  ;;  %p161_p2 = scmp.lt.s32.totalorder %s520_s14, 3 }
   0x5   : > { %s595_s15 = smov (%p28_p1, %s26_s15), 0  ;;  %p162_p3 = pnand %p432_p0, %p161_p2 }
   0x6   : > { %p197_p4 = scmp.lt.s32.totalorder (!%p162_p3), %s512_s12, 1  ;;  %v522_v0 = vmov (!%p162_p3), 0.0|0.0   ;;  %vm523_vm0 = vmmov (!%p162_p3), 0   ;;  %v524_v1 = vmov (!%p162_p3), 0.0   ;;  %v219_v11 = vld [vmem:[%s588_s0] sm:$0xff] (!%p162_p3)  ;;  %vm226_vm1 = vcmask (!%p162_p3), 392192  }
   0x7   : > { %165 = sbr.rel (%p162_p3) target bundleno = 392 (0x188), region = 28  ;;  %461 = vmatprep.subr.bf16.mxu0 (!%p162_p3), %v522_v0  ;;  %458 = vmatprep.mubr.msk.f32.mxu0 (!%p162_p3), %vm523_vm0, %v524_v1  ;;  %vm306_vm2 = vcmask (!%p162_p3), 7168   ;;  %vm308_vm3 = vcmask (!%p162_p3), 15360  }
   0xe   : > { %s597_s12 = smov (!%p197_p4, %s512_s12), 1 }
   0xf   : > { %s470_s16 = smul.u32 48, %s597_s12  ;;  %s434_s22 = sshll.u32 %s597_s12, 3 }
  0x10   : > { %s211_s25 = scalar_lea.vmem %s590_s2, %s434_s22  ;;  %s218_s28 = scalar_lea.vmem %s591_s3, %s434_s22 }
  0x11   : > { %s204_s19 = scalar_lea.vmem %s589_s1, %s470_s16 }
  0x12   : > { %v220_v2 = vld [vmem:[%s204_s19] sm:$0xff]  ;;  %v221_v3 = vld [vmem:[%s204_s19 + $0x8] sm:$0xff]  ;;  %v222_v4 = vld [vmem:[%s204_s19 + $0x10] sm:$0xff] }
  0x13   : > { %v462_v5 = vpack.c.bf16 %v221_v3, %v220_v2  ;;  %v223_v6 = vld [vmem:[%s204_s19 + $0x18] sm:$0xff]  ;;  %v224_v8 = vld [vmem:[%s204_s19 + $0x20] sm:$0xff]  ;;  %v225_v9 = vld [vmem:[%s204_s19 + $0x28] sm:$0xff] }
  0x14   : > { %v465_v7 = vpack.c.bf16 %v223_v6, %v222_v4  ;;  %v468_v10 = vpack.c.bf16 %v225_v9, %v224_v8 }
  0x15   : > { %463 = vmatpush3.bf16.msra.mxu0 %v462_v5 }
  0x16   : > { %464 = vmatprep.subr.bf16.mxu0 %v522_v0 }
  0x19   : > { %466 = vmatpush3.bf16.msra.mxu0 %v465_v7 }
  0x1a   : > { %467 = vmatprep.subr.bf16.mxu0 %v522_v0 }
  0x1d   : > { %469 = vmatpush3.bf16.msra.mxu0 %v468_v10 }
  0x20   : > { %459 = vmatmul.mubr.msk.f32.vlgmr.msra.gmra.mrb[0].mxu0 %vm226_vm1, %v219_v11 }
  0xf3   : > { %v296_v12 = vpop.f32.mrb[0].mxu0 }
  0xf4   : > { %300 = vst [vmem:[%s211_s25] sm:$0xff] %v296_v12  ;;  %301 = vadd.xlane.f32.xlu0 %v296_v12  ;;  %v460_v13 = vpop.f32.mrb[1].mxu0  ;;  %v303_v14 = vmul.f32 %v296_v12, %v296_v12 }
  0xf8   : > { %304 = vadd.xlane.f32.xlu0 %v303_v14 }
 0x181   : > { %v302_v15 = vpop.xlane.xlu0 %301 }
 0x185   : > { %v305_v16 = vpop.xlane.xlu0 %304 }
 0x186   : > { %v307_v17 = vsel %vm306_vm2, %v302_v15, %v305_v16 }
 0x187   : > { %309 = vst.msk [vmem:[%s218_s28] sm:$0xff] %vm308_vm3, %v307_v17 }
 0x188 PF: > { %s14_s14 = sadd.s32 1, %s520_s14   ;;  %s592_s12 = smov %s516_s13 }
 0x189   : > { %p11_p5 = scmp.ge.s32.totalorder %s14_s14, 4   ;;  %s593_s13 = smov %s595_s15 }
 0x18b   :  { %13 = sbr.rel (!%p11_p5) target bundleno = 2 (0x2), region = 70 }

// kernel: fully_conv_network_forward.3
= control target key start
LH: loop header
LB: loop body
LE: loop exit
PB: predicated region body
PF: predicated region fallthrough
CT: control target
= control target key end

     0   :  { %s337_s9 = smov 0   ;;  %s339_s10 = smov 0   ;;  %s370_s0 = inlined_call_operand.vmem [shape: f32[8,2], index: 0, kind: input, shape index: {}]   ;;  %s371_s1 = inlined_call_operand.vmem [shape: f32[2,8,128], index: 1, kind: input, shape index: {}]   ;;  %s372_s2 = inlined_call_operand.vmem [shape: f32[2,8,128], index: 2, kind: output, shape index: {}]  }
   0x1   :  { %s341_s11 = smov 0  }
   0x2 LB: > { %s24_s12 = sadd.s32 1, %s314_s10  ;;  %p263_p0 = scmp.ge.s32.totalorder %s318_s11, 1  ;;  %s318_s11 = sphi %s341_s11, %s12_s11   ;;  %s314_s10 = sphi %s339_s10, %s374_s10   ;;  %s310_s9 = sphi %s337_s9, %s373_s9  }
   0x3   : > { %p26_p1 = scmp.ge.s32.totalorder %s24_s12, 2  ;;  %p130_p2 = scmp.lt.s32.totalorder %s318_s11, 3 }
   0x5   : > { %s376_s12 = smov (%p26_p1, %s24_s12), 0  ;;  %p131_p3 = pnand %p263_p0, %p130_p2 }
   0x6   : > { %v170_v0 = vld [vmem:[%s370_s0] sm:$0xff] (!%p131_p3)  ;;  %v320_v1 = vmov (!%p131_p3), 0   ;;  %v321_v2 = vmov (!%p131_p3), 1   ;;  %p156_p4 = scmp.lt.s32.totalorder (!%p131_p3), %s310_s9, 1 }
   0x7   : > { %134 = sbr.rel (%p131_p3) target bundleno = 146 (0x92), region = 28  ;;  %294 = vset.pattern.permute.xlu0 (!%p131_p3), %v320_v1 }
   0x8   : > { %174 = vperm.xlu0 (!%p131_p3), %294, %v170_v0  }
   0xc   : > { %295 = vset.pattern.permute.xlu0 (!%p131_p3), %v321_v2 }
   0xd   : > { %179 = vperm.xlu0 (!%p131_p3), %295, %v170_v0  }
   0xe   : > { %s378_s9 = smov (!%p156_p4, %s310_s9), 1 }
   0xf   : > { %s264_s15 = sshll.u32 %s378_s9, 3 }
  0x10   : > { %s162_s18 = scalar_lea.vmem %s371_s1, %s264_s15  ;;  %s169_s21 = scalar_lea.vmem %s372_s2, %s264_s15 }
  0x11   : > { %v171_v4 = vld [vmem:[%s162_s18] sm:$0xff] }
  0x87   : > { %v175_v3 = vpop.permute.xlu0 %174 }
  0x88   : > { %v177_v5 = vmul.f32 %v175_v3, %v171_v4 }
  0x8c   : > { %v180_v6 = vpop.permute.xlu0 %179 }
  0x8d   : > { %v182_v7 = vadd.f32 %v180_v6, %v177_v5 }
  0x8f   : > { %v183_v8 = vmax.f32 %v182_v7, 0.0 }
  0x91   : > { %184 = vst [vmem:[%s169_s21] sm:$0xff] %v183_v8 }
  0x92 PF: > { %s12_s11 = sadd.s32 1, %s318_s11   ;;  %s373_s9 = smov %s314_s10 }
  0x93   : > { %p9_p5 = scmp.ge.s32.totalorder %s12_s11, 4   ;;  %s374_s10 = smov %s376_s12 }
  0x95   :  { %11 = sbr.rel (!%p9_p5) target bundleno = 2 (0x2), region = 58 }

</bundles_post_ra>
